<compile_context>
chip_gen: v5e
topology: v5e:2x2
jax: 0.10.0
libtpu: 0.0.40
codegen_flags: <defaults>
</compile_context>

<pallas_src>
import functools

import jax
import jax.numpy as jnp
from jax import lax
from jax.experimental import pallas as pl
from jax.experimental.pallas import tpu as pltpu

NUM_HIDDEN = 100
NUM_OUTPUTS = 10
THRESHOLD = 1.0
LANE = 128      # vreg lane width
SUBLANE = 8     # vreg sublane width (f32)


def _round_up(x: int, m: int) -> int:
    return (x + m - 1) // m * m


def make_snn_kernel(beta: float, num_groups: int, steps_per_group: int,
                    rows_per_step: int, tile_rows: int, unroll: int):
    """Kernel closure.

    The flattened slab has `rows_per_step` rows per timestep; `steps_per_group`
    consecutive timesteps share one aligned (tile_rows, lane) tile.
    """

    def kernel(x_ref, w1_ref, b1_ref, w2_ref, b2_ref,   # inputs   (VMEM)
               mem_out_ref,                             # output   (VMEM)
               cur1_ref):                               # scratch  (VMEM)
        h_pad = w1_ref.shape[1]
        o_pad = w2_ref.shape[1]

        # ---- fc1 hoisted out of the recurrence ----------------------------------
        # One (R, N_in) @ (N_in, Hp) MXU matmul + one bias broadcast for all steps.
        cur1_ref[...] = (
            jnp.dot(x_ref[...], w1_ref[...], preferred_element_type=jnp.float32)
            + b1_ref[...]
        )

        # Row-placement masks for packing steps_per_group timesteps into one tile.
        # Hoisted: computed once, reused by every group (broadcasts are not CSE'd).
        row_ids = lax.broadcasted_iota(jnp.int32, (tile_rows, o_pad), 0)
        place_masks = [
            (row_ids >= s * rows_per_step) & (row_ids < (s + 1) * rows_per_step)
            for s in range(steps_per_group)
        ]

        def group(g, carry):
            mem1, mem2 = carry
            row0 = pl.multiple_of(g * tile_rows, SUBLANE)   # tile-aligned slab offset

            # One aligned (tile_rows, Hp) load covers steps_per_group timesteps.
            cur1_tile = cur1_ref[pl.ds(row0, tile_rows), :]

            # Loop-invariant fc2 operands re-read per group: VMEM reloads are nearly
            # free (3 vld slots/cycle) and this avoids keeping w2's 16 f32 vregs live
            # across the whole unrolled recurrence (spill avoidance).
            # TODO(synk): weight-stationary fc2 (pltpu.matmul_push_rhs once before the
            # loop + matmul_acc_lhs/matmul_pop per step) if the bundle dump shows the
            # 128x128 w2 being re-pushed into the MXU every step.
            w2 = w2_ref[...]
            b2 = b2_ref[...]

            out_tile = jnp.zeros((tile_rows, o_pad), jnp.float32)
            for s in range(steps_per_group):
                off = s * rows_per_step
                # Rotate this timestep's rows to the top of the tile (XLU, ~free).
                cur1 = pltpu.roll(cur1_tile, tile_rows - off, axis=0) if off else cur1_tile

                # ---- LIF1 (snn.Leaky, subtract reset) ----
                reset1 = (mem1 > THRESHOLD).astype(jnp.float32)
                mem1 = beta * mem1 + cur1 - reset1 * THRESHOLD
                spk1 = (mem1 > THRESHOLD).astype(jnp.float32)

                # ---- fc2 + LIF2 ----
                cur2 = jnp.dot(spk1, w2, preferred_element_type=jnp.float32) + b2
                reset2 = (mem2 > THRESHOLD).astype(jnp.float32)
                mem2 = beta * mem2 + cur2 - reset2 * THRESHOLD

                # Place this step's membrane rows back at their slab position.
                if steps_per_group == 1:
                    out_tile = mem2
                else:
                    placed = pltpu.roll(mem2, off, axis=0) if off else mem2
                    out_tile = jnp.where(place_masks[s], placed, out_tile)

            # One aligned, lane-dense tile store per steps_per_group timesteps
            # (spk is NOT recorded; recomputed from mem in the wrapper).
            mem_out_ref[pl.ds(row0, tile_rows), :] = out_tile
            return mem1, mem2

        mem1_0 = jnp.zeros((tile_rows, h_pad), jnp.float32)   # lif1.init_leaky()
        mem2_0 = jnp.zeros((tile_rows, o_pad), jnp.float32)   # lif2.init_leaky()
        lax.fori_loop(0, num_groups, group, (mem1_0, mem2_0), unroll=unroll)

    return kernel


@functools.partial(jax.jit, static_argnames=("beta",))
def simple_fc_forward(x_btn, w1, b1, w2, b2, *, beta: float):
    """SimpleFC forward.

    x_btn: [B, T, N_in] (PyTorch layout; the module indexes x[:, step]).
    w1: [N_in, H] (nn.Linear weight pre-transposed), b1: [H]
    w2: [H, O],                                        b2: [O]
    Returns (spk2_rec, mem2_rec), each [T, B, O] == torch.stack(..., dim=0).
    """
    B, T, N_in = x_btn.shape
    H = w1.shape[1]
    O = w2.shape[1]

    Hp = _round_up(H, LANE)       # 100 -> 128
    Op = _round_up(O, LANE)       # 10  -> 128

    # Small-batch timestep packing: B=2 -> 4 timesteps per 8-row sublane tile.
    if B < SUBLANE and SUBLANE % B == 0:
        rows_per_step = B
        steps_per_group = SUBLANE // B
    else:
        rows_per_step = _round_up(B, SUBLANE)
        steps_per_group = 1
    num_groups = -(-T // steps_per_group)
    Tp = num_groups * steps_per_group
    tile_rows = steps_per_group * rows_per_step      # multiple of 8
    R = num_groups * tile_rows                       # total slab rows
    unroll = max(1, min(num_groups, 8))              # bounded unroll (LLO visibility,
                                                     # no instruction-memory blowup)

    # Zero-pad weights AND biases so padded lanes never spike / never contaminate.
    # TODO(synk): optional bf16 cast of MXU operands (spk1 is exact in bf16) for
    # v6e/v7x throughput; kept f32 here for exact spike parity with the reference.
    w1p = jnp.zeros((N_in, Hp), jnp.float32).at[:, :H].set(w1.astype(jnp.float32))
    b1p = jnp.zeros((1, Hp), jnp.float32).at[0, :H].set(b1.astype(jnp.float32))
    w2p = jnp.zeros((Hp, Op), jnp.float32).at[:H, :O].set(w2.astype(jnp.float32))
    b2p = jnp.zeros((1, Op), jnp.float32).at[0, :O].set(b2.astype(jnp.float32))

    # Time-major, flattened to one 2D slab: row r = t * rows_per_step + b.
    # Padding (phantom trailing timesteps / padded batch rows) is zero and is
    # sliced off after the kernel; phantom steps only occur after all real steps,
    # so they cannot affect recorded outputs.
    x_tbn = jnp.transpose(x_btn.astype(jnp.float32), (1, 0, 2))          # (T, B, N_in)
    x_pad = jnp.zeros((Tp, rows_per_step, N_in), jnp.float32).at[:T, :B, :].set(x_tbn)
    x_flat = x_pad.reshape(R, N_in)                                       # (R, N_in)

    # Explicit scoped-VMEM budget sized from the resident slabs (+2x headroom).
    lane_in = _round_up(N_in, LANE)  # x is lane-padded inside VMEM
    slab_bytes = 4 * (R * lane_in + R * Hp + R * Op
                      + lane_in * Hp + Hp + Hp * Op + Op)
    vmem_limit = int(min(64 * 1024 * 1024, max(16 * 1024 * 1024, 2 * slab_bytes)))
    # TODO(synk): for large T on v7x (64 MiB VMEM), chunk the time axis (grid over
    # T-chunks with "arbitrary" semantics, mem1/mem2 in persistent scratch) instead
    # of keeping all slabs resident.
    # TODO(synk): for B >= 16 on v7x, add a leading "parallel" batch grid axis so the
    # independent batch rows shard across the two TensorCores.

    vmem = pl.BlockSpec(memory_space=pltpu.MemorySpace.VMEM)

    mem_flat = pl.pallas_call(
        make_snn_kernel(beta, num_groups, steps_per_group, rows_per_step,
                        tile_rows, unroll),
        out_shape=jax.ShapeDtypeStruct((R, Op), jnp.float32),
        in_specs=[vmem] * 5,
        out_specs=vmem,
        scratch_shapes=[pltpu.VMEM((R, Hp), jnp.float32)],   # hoisted cur1 slab
        compiler_params=pltpu.CompilerParams(vmem_limit_bytes=vmem_limit),
    )(x_flat, w1p, b1p, w2p, b2p)

    mem = mem_flat.reshape(Tp, rows_per_step, Op)[:T, :B, :O]
    # spk recomputed here: bit-identical to the in-kernel comparison, saves one
    # output slab + one compare/store per step inside the serial recurrence.
    spk = (mem > THRESHOLD).astype(jnp.float32)
    return spk, mem


def reference_forward(x_btn, w1, b1, w2, b2, beta):
    """Pure-JAX reference with identical snn.Leaky (subtract-reset) semantics."""
    B, T, _ = x_btn.shape
    H, O = w1.shape[1], w2.shape[1]
    mem1 = jnp.zeros((B, H), jnp.float32)
    mem2 = jnp.zeros((B, O), jnp.float32)
    spks, mems = [], []
    for t in range(T):
        cur1 = x_btn[:, t] @ w1 + b1
        reset1 = (mem1 > THRESHOLD).astype(jnp.float32)
        mem1 = beta * mem1 + cur1 - reset1 * THRESHOLD
        spk1 = (mem1 > THRESHOLD).astype(jnp.float32)
        cur2 = spk1 @ w2 + b2
        reset2 = (mem2 > THRESHOLD).astype(jnp.float32)
        mem2 = beta * mem2 + cur2 - reset2 * THRESHOLD
        spk2 = (mem2 > THRESHOLD).astype(jnp.float32)
        spks.append(spk2)
        mems.append(mem2)
    return jnp.stack(spks, 0), jnp.stack(mems, 0)


if __name__ == "__main__":
    # Small deterministic setup consistent with SimpleFC(beta, num_steps, num_input)
    beta = 0.9
    num_steps = 8
    num_input = 32
    batch = 2

    key = jax.random.PRNGKey(0)
    kx, k1, k2, k3, k4 = jax.random.split(key, 5)

    # Input in the PyTorch layout the module expects: [B, T, N_in]
    x_btn = jax.random.normal(kx, (batch, num_steps, num_input), dtype=jnp.float32)

    # Deterministic nn.Linear-style init, stored pre-transposed so cur = x @ W + b.
    bound1 = 1.0 / (num_input ** 0.5)
    w1 = jax.random.uniform(k1, (num_input, NUM_HIDDEN), jnp.float32, -bound1, bound1)
    b1 = jax.random.uniform(k2, (NUM_HIDDEN,), jnp.float32, -bound1, bound1)
    bound2 = 1.0 / (NUM_HIDDEN ** 0.5)
    w2 = jax.random.uniform(k3, (NUM_HIDDEN, NUM_OUTPUTS), jnp.float32, -bound2, bound2)
    b2 = jax.random.uniform(k4, (NUM_OUTPUTS,), jnp.float32, -bound2, bound2)

    spk2_rec, mem2_rec = simple_fc_forward(x_btn, w1, b1, w2, b2, beta=beta)
    jax.block_until_ready((spk2_rec, mem2_rec))

    assert spk2_rec.shape == (num_steps, batch, NUM_OUTPUTS)
    assert mem2_rec.shape == (num_steps, batch, NUM_OUTPUTS)

    # Correctness check against a pure-JAX reference of the PyTorch forward.
    spk_expected, mem_expected = reference_forward(x_btn, w1, b1, w2, b2, beta)
    assert jnp.allclose(mem2_rec, mem_expected, atol=1e-4, rtol=1e-4)
    assert jnp.allclose(spk2_rec, spk_expected)

    print("KERNEL_OK")
</pallas_src>

<mosaic_0001>
module attributes {stable_mosaic.version = 11 : i64} {
  func.func @kernel(%arg0: memref<16x32xf32, #tpu.memory_space<vmem>>, %arg1: memref<32x128xf32, #tpu.memory_space<vmem>>, %arg2: memref<1x128xf32, #tpu.memory_space<vmem>>, %arg3: memref<128x128xf32, #tpu.memory_space<vmem>>, %arg4: memref<1x128xf32, #tpu.memory_space<vmem>>, %arg5: memref<16x128xf32, #tpu.memory_space<vmem>>, %arg6: memref<16x128xf32, #tpu.memory_space<vmem>>) attributes {dimension_semantics = [], scalar_prefetch = 0 : i64, scratch_operands = 1 : i64, tpu.core_type = #tpu.core_type<tc>} {
    %c0 = arith.constant 0 : index
    %c0_0 = arith.constant 0 : index
    %0 = vector.load %arg0[%c0, %c0_0] : memref<16x32xf32, #tpu.memory_space<vmem>>, vector<16x32xf32>
    %c0_1 = arith.constant 0 : index
    %c0_2 = arith.constant 0 : index
    %1 = vector.load %arg1[%c0_1, %c0_2] : memref<32x128xf32, #tpu.memory_space<vmem>>, vector<32x128xf32>
    %cst = arith.constant dense<0.000000e+00> : vector<16x128xf32>
    %2 = tpu.matmul %0, %1, %cst {dimension_numbers = #tpu.dot_dimension_numbers<[1], [0], [0], [1], [0, 0, 1, 1], [], []>} : vector<16x32xf32>, vector<32x128xf32>, vector<16x128xf32> -> vector<16x128xf32>
    %c0_3 = arith.constant 0 : index
    %c0_4 = arith.constant 0 : index
    %3 = vector.load %arg2[%c0_3, %c0_4] : memref<1x128xf32, #tpu.memory_space<vmem>>, vector<1x128xf32>
    %4 = vector.broadcast %3 : vector<1x128xf32> to vector<16x128xf32>
    %5 = arith.addf %2, %4 : vector<16x128xf32>
    %c0_5 = arith.constant 0 : index
    %c0_6 = arith.constant 0 : index
    %6 = vector.load %arg6[%c0_5, %c0_6] : memref<16x128xf32, #tpu.memory_space<vmem>>, vector<16x128xf32>
    tpu.vector_store %arg6[%c0_5, %c0_6], %5 {strides = array<i32>} : memref<16x128xf32, #tpu.memory_space<vmem>>, vector<16x128xf32>,
    %7 = tpu.iota {dimensions = array<i32: 0>} : vector<8x128xi32>
    %c0_i32 = arith.constant 0 : i32
    %8 = vector.broadcast %c0_i32 : i32 to vector<8x128xi32>
    %9 = arith.cmpi sge, %7, %8 : vector<8x128xi32>
    %c2_i32 = arith.constant 2 : i32
    %10 = vector.broadcast %c2_i32 : i32 to vector<8x128xi32>
    %11 = arith.cmpi slt, %7, %10 : vector<8x128xi32>
    %12 = arith.andi %9, %11 : vector<8x128xi1>
    %c2_i32_7 = arith.constant 2 : i32
    %13 = vector.broadcast %c2_i32_7 : i32 to vector<8x128xi32>
    %14 = arith.cmpi sge, %7, %13 : vector<8x128xi32>
    %c4_i32 = arith.constant 4 : i32
    %15 = vector.broadcast %c4_i32 : i32 to vector<8x128xi32>
    %16 = arith.cmpi slt, %7, %15 : vector<8x128xi32>
    %17 = arith.andi %14, %16 : vector<8x128xi1>
    %c4_i32_8 = arith.constant 4 : i32
    %18 = vector.broadcast %c4_i32_8 : i32 to vector<8x128xi32>
    %19 = arith.cmpi sge, %7, %18 : vector<8x128xi32>
    %c6_i32 = arith.constant 6 : i32
    %20 = vector.broadcast %c6_i32 : i32 to vector<8x128xi32>
    %21 = arith.cmpi slt, %7, %20 : vector<8x128xi32>
    %22 = arith.andi %19, %21 : vector<8x128xi1>
    %c6_i32_9 = arith.constant 6 : i32
    %23 = vector.broadcast %c6_i32_9 : i32 to vector<8x128xi32>
    %24 = arith.cmpi sge, %7, %23 : vector<8x128xi32>
    %c8_i32 = arith.constant 8 : i32
    %25 = vector.broadcast %c8_i32 : i32 to vector<8x128xi32>
    %26 = arith.cmpi slt, %7, %25 : vector<8x128xi32>
    %27 = arith.andi %24, %26 : vector<8x128xi1>
    %cst_10 = arith.constant 0.000000e+00 : f32
    %28 = vector.broadcast %cst_10 : f32 to vector<8x128xf32>
    %cst_11 = arith.constant 0.000000e+00 : f32
    %29 = vector.broadcast %cst_11 : f32 to vector<8x128xf32>
    %c0_i32_12 = arith.constant 0 : i32
    %c8_i32_13 = arith.constant 8 : i32
    %30 = arith.muli %c0_i32_12, %c8_i32_13 : i32
    %31 = tpu.assume_multiple %30, 8 : i32
    %32 = arith.index_cast %31 : i32 to index
    %c0_14 = arith.constant 0 : index
    %33 = vector.load %arg6[%32, %c0_14] : memref<16x128xf32, #tpu.memory_space<vmem>>, vector<8x128xf32>
    %c0_15 = arith.constant 0 : index
    %c0_16 = arith.constant 0 : index
    %34 = vector.load %arg3[%c0_15, %c0_16] : memref<128x128xf32, #tpu.memory_space<vmem>>, vector<128x128xf32>
    %c0_17 = arith.constant 0 : index
    %c0_18 = arith.constant 0 : index
    %35 = vector.load %arg4[%c0_17, %c0_18] : memref<1x128xf32, #tpu.memory_space<vmem>>, vector<1x128xf32>
    %cst_19 = arith.constant 0.000000e+00 : f32
    %36 = vector.broadcast %cst_19 : f32 to vector<8x128xf32>
    %cst_20 = arith.constant 1.000000e+00 : f32
    %37 = vector.broadcast %cst_20 : f32 to vector<8x128xf32>
    %38 = arith.cmpf ogt, %28, %37 : vector<8x128xf32>
    %39 = arith.extui %38 : vector<8x128xi1> to vector<8x128xi32>
    %40 = arith.sitofp %39 : vector<8x128xi32> to vector<8x128xf32>
    %cst_21 = arith.constant 0.899999976 : f32
    %41 = vector.broadcast %cst_21 : f32 to vector<8x128xf32>
    %42 = arith.mulf %41, %28 : vector<8x128xf32>
    %43 = arith.addf %42, %33 : vector<8x128xf32>
    %cst_22 = arith.constant 1.000000e+00 : f32
    %44 = vector.broadcast %cst_22 : f32 to vector<8x128xf32>
    %45 = arith.mulf %40, %44 : vector<8x128xf32>
    %46 = arith.subf %43, %45 : vector<8x128xf32>
    %cst_23 = arith.constant 1.000000e+00 : f32
    %47 = vector.broadcast %cst_23 : f32 to vector<8x128xf32>
    %48 = arith.cmpf ogt, %46, %47 : vector<8x128xf32>
    %49 = arith.extui %48 : vector<8x128xi1> to vector<8x128xi32>
    %50 = arith.sitofp %49 : vector<8x128xi32> to vector<8x128xf32>
    %cst_24 = arith.constant dense<0.000000e+00> : vector<8x128xf32>
    %51 = tpu.matmul %50, %34, %cst_24 {dimension_numbers = #tpu.dot_dimension_numbers<[1], [0], [0], [1], [0, 0, 1, 1], [], []>} : vector<8x128xf32>, vector<128x128xf32>, vector<8x128xf32> -> vector<8x128xf32>
    %52 = vector.broadcast %35 : vector<1x128xf32> to vector<8x128xf32>
    %53 = arith.addf %51, %52 : vector<8x128xf32>
    %cst_25 = arith.constant 1.000000e+00 : f32
    %54 = vector.broadcast %cst_25 : f32 to vector<8x128xf32>
    %55 = arith.cmpf ogt, %29, %54 : vector<8x128xf32>
    %56 = arith.extui %55 : vector<8x128xi1> to vector<8x128xi32>
    %57 = arith.sitofp %56 : vector<8x128xi32> to vector<8x128xf32>
    %cst_26 = arith.constant 0.899999976 : f32
    %58 = vector.broadcast %cst_26 : f32 to vector<8x128xf32>
    %59 = arith.mulf %58, %29 : vector<8x128xf32>
    %60 = arith.addf %59, %53 : vector<8x128xf32>
    %cst_27 = arith.constant 1.000000e+00 : f32
    %61 = vector.broadcast %cst_27 : f32 to vector<8x128xf32>
    %62 = arith.mulf %57, %61 : vector<8x128xf32>
    %63 = arith.subf %60, %62 : vector<8x128xf32>
    %64 = arith.select %12, %63, %36 : vector<8x128xi1>, vector<8x128xf32>
    %c6_i32_28 = arith.constant 6 : i32
    %65 = tpu.dynamic_rotate %33 by %c6_i32_28 dim 0 : vector<8x128xf32>, i32 -> vector<8x128xf32>
    %cst_29 = arith.constant 1.000000e+00 : f32
    %66 = vector.broadcast %cst_29 : f32 to vector<8x128xf32>
    %67 = arith.cmpf ogt, %46, %66 : vector<8x128xf32>
    %68 = arith.extui %67 : vector<8x128xi1> to vector<8x128xi32>
    %69 = arith.sitofp %68 : vector<8x128xi32> to vector<8x128xf32>
    %cst_30 = arith.constant 0.899999976 : f32
    %70 = vector.broadcast %cst_30 : f32 to vector<8x128xf32>
    %71 = arith.mulf %70, %46 : vector<8x128xf32>
    %72 = arith.addf %71, %65 : vector<8x128xf32>
    %cst_31 = arith.constant 1.000000e+00 : f32
    %73 = vector.broadcast %cst_31 : f32 to vector<8x128xf32>
    %74 = arith.mulf %69, %73 : vector<8x128xf32>
    %75 = arith.subf %72, %74 : vector<8x128xf32>
    %cst_32 = arith.constant 1.000000e+00 : f32
    %76 = vector.broadcast %cst_32 : f32 to vector<8x128xf32>
    %77 = arith.cmpf ogt, %75, %76 : vector<8x128xf32>
    %78 = arith.extui %77 : vector<8x128xi1> to vector<8x128xi32>
    %79 = arith.sitofp %78 : vector<8x128xi32> to vector<8x128xf32>
    %cst_33 = arith.constant dense<0.000000e+00> : vector<8x128xf32>
    %80 = tpu.matmul %79, %34, %cst_33 {dimension_numbers = #tpu.dot_dimension_numbers<[1], [0], [0], [1], [0, 0, 1, 1], [], []>} : vector<8x128xf32>, vector<128x128xf32>, vector<8x128xf32> -> vector<8x128xf32>
    %81 = vector.broadcast %35 : vector<1x128xf32> to vector<8x128xf32>
    %82 = arith.addf %80, %81 : vector<8x128xf32>
    %cst_34 = arith.constant 1.000000e+00 : f32
    %83 = vector.broadcast %cst_34 : f32 to vector<8x128xf32>
    %84 = arith.cmpf ogt, %63, %83 : vector<8x128xf32>
    %85 = arith.extui %84 : vector<8x128xi1> to vector<8x128xi32>
    %86 = arith.sitofp %85 : vector<8x128xi32> to vector<8x128xf32>
    %cst_35 = arith.constant 0.899999976 : f32
    %87 = vector.broadcast %cst_35 : f32 to vector<8x128xf32>
    %88 = arith.mulf %87, %63 : vector<8x128xf32>
    %89 = arith.addf %88, %82 : vector<8x128xf32>
    %cst_36 = arith.constant 1.000000e+00 : f32
    %90 = vector.broadcast %cst_36 : f32 to vector<8x128xf32>
    %91 = arith.mulf %86, %90 : vector<8x128xf32>
    %92 = arith.subf %89, %91 : vector<8x128xf32>
    %c2_i32_37 = arith.constant 2 : i32
    %93 = tpu.dynamic_rotate %92 by %c2_i32_37 dim 0 : vector<8x128xf32>, i32 -> vector<8x128xf32>
    %94 = arith.select %17, %93, %64 : vector<8x128xi1>, vector<8x128xf32>
    %c4_i32_38 = arith.constant 4 : i32
    %95 = tpu.dynamic_rotate %33 by %c4_i32_38 dim 0 : vector<8x128xf32>, i32 -> vector<8x128xf32>
    %cst_39 = arith.constant 1.000000e+00 : f32
    %96 = vector.broadcast %cst_39 : f32 to vector<8x128xf32>
    %97 = arith.cmpf ogt, %75, %96 : vector<8x128xf32>
    %98 = arith.extui %97 : vector<8x128xi1> to vector<8x128xi32>
    %99 = arith.sitofp %98 : vector<8x128xi32> to vector<8x128xf32>
    %cst_40 = arith.constant 0.899999976 : f32
    %100 = vector.broadcast %cst_40 : f32 to vector<8x128xf32>
    %101 = arith.mulf %100, %75 : vector<8x128xf32>
    %102 = arith.addf %101, %95 : vector<8x128xf32>
    %cst_41 = arith.constant 1.000000e+00 : f32
    %103 = vector.broadcast %cst_41 : f32 to vector<8x128xf32>
    %104 = arith.mulf %99, %103 : vector<8x128xf32>
    %105 = arith.subf %102, %104 : vector<8x128xf32>
    %cst_42 = arith.constant 1.000000e+00 : f32
    %106 = vector.broadcast %cst_42 : f32 to vector<8x128xf32>
    %107 = arith.cmpf ogt, %105, %106 : vector<8x128xf32>
    %108 = arith.extui %107 : vector<8x128xi1> to vector<8x128xi32>
    %109 = arith.sitofp %108 : vector<8x128xi32> to vector<8x128xf32>
    %cst_43 = arith.constant dense<0.000000e+00> : vector<8x128xf32>
    %110 = tpu.matmul %109, %34, %cst_43 {dimension_numbers = #tpu.dot_dimension_numbers<[1], [0], [0], [1], [0, 0, 1, 1], [], []>} : vector<8x128xf32>, vector<128x128xf32>, vector<8x128xf32> -> vector<8x128xf32>
    %111 = vector.broadcast %35 : vector<1x128xf32> to vector<8x128xf32>
    %112 = arith.addf %110, %111 : vector<8x128xf32>
    %cst_44 = arith.constant 1.000000e+00 : f32
    %113 = vector.broadcast %cst_44 : f32 to vector<8x128xf32>
    %114 = arith.cmpf ogt, %92, %113 : vector<8x128xf32>
    %115 = arith.extui %114 : vector<8x128xi1> to vector<8x128xi32>
    %116 = arith.sitofp %115 : vector<8x128xi32> to vector<8x128xf32>
    %cst_45 = arith.constant 0.899999976 : f32
    %117 = vector.broadcast %cst_45 : f32 to vector<8x128xf32>
    %118 = arith.mulf %117, %92 : vector<8x128xf32>
    %119 = arith.addf %118, %112 : vector<8x128xf32>
    %cst_46 = arith.constant 1.000000e+00 : f32
    %120 = vector.broadcast %cst_46 : f32 to vector<8x128xf32>
    %121 = arith.mulf %116, %120 : vector<8x128xf32>
    %122 = arith.subf %119, %121 : vector<8x128xf32>
    %c4_i32_47 = arith.constant 4 : i32
    %123 = tpu.dynamic_rotate %122 by %c4_i32_47 dim 0 : vector<8x128xf32>, i32 -> vector<8x128xf32>
    %124 = arith.select %22, %123, %94 : vector<8x128xi1>, vector<8x128xf32>
    %c2_i32_48 = arith.constant 2 : i32
    %125 = tpu.dynamic_rotate %33 by %c2_i32_48 dim 0 : vector<8x128xf32>, i32 -> vector<8x128xf32>
    %cst_49 = arith.constant 1.000000e+00 : f32
    %126 = vector.broadcast %cst_49 : f32 to vector<8x128xf32>
    %127 = arith.cmpf ogt, %105, %126 : vector<8x128xf32>
    %128 = arith.extui %127 : vector<8x128xi1> to vector<8x128xi32>
    %129 = arith.sitofp %128 : vector<8x128xi32> to vector<8x128xf32>
    %cst_50 = arith.constant 0.899999976 : f32
    %130 = vector.broadcast %cst_50 : f32 to vector<8x128xf32>
    %131 = arith.mulf %130, %105 : vector<8x128xf32>
    %132 = arith.addf %131, %125 : vector<8x128xf32>
    %cst_51 = arith.constant 1.000000e+00 : f32
    %133 = vector.broadcast %cst_51 : f32 to vector<8x128xf32>
    %134 = arith.mulf %129, %133 : vector<8x128xf32>
    %135 = arith.subf %132, %134 : vector<8x128xf32>
    %cst_52 = arith.constant 1.000000e+00 : f32
    %136 = vector.broadcast %cst_52 : f32 to vector<8x128xf32>
    %137 = arith.cmpf ogt, %135, %136 : vector<8x128xf32>
    %138 = arith.extui %137 : vector<8x128xi1> to vector<8x128xi32>
    %139 = arith.sitofp %138 : vector<8x128xi32> to vector<8x128xf32>
    %cst_53 = arith.constant dense<0.000000e+00> : vector<8x128xf32>
    %140 = tpu.matmul %139, %34, %cst_53 {dimension_numbers = #tpu.dot_dimension_numbers<[1], [0], [0], [1], [0, 0, 1, 1], [], []>} : vector<8x128xf32>, vector<128x128xf32>, vector<8x128xf32> -> vector<8x128xf32>
    %141 = vector.broadcast %35 : vector<1x128xf32> to vector<8x128xf32>
    %142 = arith.addf %140, %141 : vector<8x128xf32>
    %cst_54 = arith.constant 1.000000e+00 : f32
    %143 = vector.broadcast %cst_54 : f32 to vector<8x128xf32>
    %144 = arith.cmpf ogt, %122, %143 : vector<8x128xf32>
    %145 = arith.extui %144 : vector<8x128xi1> to vector<8x128xi32>
    %146 = arith.sitofp %145 : vector<8x128xi32> to vector<8x128xf32>
    %cst_55 = arith.constant 0.899999976 : f32
    %147 = vector.broadcast %cst_55 : f32 to vector<8x128xf32>
    %148 = arith.mulf %147, %122 : vector<8x128xf32>
    %149 = arith.addf %148, %142 : vector<8x128xf32>
    %cst_56 = arith.constant 1.000000e+00 : f32
    %150 = vector.broadcast %cst_56 : f32 to vector<8x128xf32>
    %151 = arith.mulf %146, %150 : vector<8x128xf32>
    %152 = arith.subf %149, %151 : vector<8x128xf32>
    %c6_i32_57 = arith.constant 6 : i32
    %153 = tpu.dynamic_rotate %152 by %c6_i32_57 dim 0 : vector<8x128xf32>, i32 -> vector<8x128xf32>
    %154 = arith.select %27, %153, %124 : vector<8x128xi1>, vector<8x128xf32>
    %155 = arith.index_cast %31 : i32 to index
    %c0_58 = arith.constant 0 : index
    %156 = vector.load %arg5[%155, %c0_58] : memref<16x128xf32, #tpu.memory_space<vmem>>, vector<8x128xf32>
    tpu.vector_store %arg5[%155, %c0_58], %154 {strides = array<i32>} : memref<16x128xf32, #tpu.memory_space<vmem>>, vector<8x128xf32>,
    %c1_i32 = arith.constant 1 : i32
    %c8_i32_59 = arith.constant 8 : i32
    %157 = arith.muli %c1_i32, %c8_i32_59 : i32
    %158 = tpu.assume_multiple %157, 8 : i32
    %159 = arith.index_cast %158 : i32 to index
    %c0_60 = arith.constant 0 : index
    %160 = vector.load %arg6[%159, %c0_60] : memref<16x128xf32, #tpu.memory_space<vmem>>, vector<8x128xf32>
    %c0_61 = arith.constant 0 : index
    %c0_62 = arith.constant 0 : index
    %161 = vector.load %arg3[%c0_61, %c0_62] : memref<128x128xf32, #tpu.memory_space<vmem>>, vector<128x128xf32>
    %c0_63 = arith.constant 0 : index
    %c0_64 = arith.constant 0 : index
    %162 = vector.load %arg4[%c0_63, %c0_64] : memref<1x128xf32, #tpu.memory_space<vmem>>, vector<1x128xf32>
    %cst_65 = arith.constant 0.000000e+00 : f32
    %163 = vector.broadcast %cst_65 : f32 to vector<8x128xf32>
    %cst_66 = arith.constant 1.000000e+00 : f32
    %164 = vector.broadcast %cst_66 : f32 to vector<8x128xf32>
    %165 = arith.cmpf ogt, %135, %164 : vector<8x128xf32>
    %166 = arith.extui %165 : vector<8x128xi1> to vector<8x128xi32>
    %167 = arith.sitofp %166 : vector<8x128xi32> to vector<8x128xf32>
    %cst_67 = arith.constant 0.899999976 : f32
    %168 = vector.broadcast %cst_67 : f32 to vector<8x128xf32>
    %169 = arith.mulf %168, %135 : vector<8x128xf32>
    %170 = arith.addf %169, %160 : vector<8x128xf32>
    %cst_68 = arith.constant 1.000000e+00 : f32
    %171 = vector.broadcast %cst_68 : f32 to vector<8x128xf32>
    %172 = arith.mulf %167, %171 : vector<8x128xf32>
    %173 = arith.subf %170, %172 : vector<8x128xf32>
    %cst_69 = arith.constant 1.000000e+00 : f32
    %174 = vector.broadcast %cst_69 : f32 to vector<8x128xf32>
    %175 = arith.cmpf ogt, %173, %174 : vector<8x128xf32>
    %176 = arith.extui %175 : vector<8x128xi1> to vector<8x128xi32>
    %177 = arith.sitofp %176 : vector<8x128xi32> to vector<8x128xf32>
    %cst_70 = arith.constant dense<0.000000e+00> : vector<8x128xf32>
    %178 = tpu.matmul %177, %161, %cst_70 {dimension_numbers = #tpu.dot_dimension_numbers<[1], [0], [0], [1], [0, 0, 1, 1], [], []>} : vector<8x128xf32>, vector<128x128xf32>, vector<8x128xf32> -> vector<8x128xf32>
    %179 = vector.broadcast %162 : vector<1x128xf32> to vector<8x128xf32>
    %180 = arith.addf %178, %179 : vector<8x128xf32>
    %cst_71 = arith.constant 1.000000e+00 : f32
    %181 = vector.broadcast %cst_71 : f32 to vector<8x128xf32>
    %182 = arith.cmpf ogt, %152, %181 : vector<8x128xf32>
    %183 = arith.extui %182 : vector<8x128xi1> to vector<8x128xi32>
    %184 = arith.sitofp %183 : vector<8x128xi32> to vector<8x128xf32>
    %cst_72 = arith.constant 0.899999976 : f32
    %185 = vector.broadcast %cst_72 : f32 to vector<8x128xf32>
    %186 = arith.mulf %185, %152 : vector<8x128xf32>
    %187 = arith.addf %186, %180 : vector<8x128xf32>
    %cst_73 = arith.constant 1.000000e+00 : f32
    %188 = vector.broadcast %cst_73 : f32 to vector<8x128xf32>
    %189 = arith.mulf %184, %188 : vector<8x128xf32>
    %190 = arith.subf %187, %189 : vector<8x128xf32>
    %191 = arith.select %12, %190, %163 : vector<8x128xi1>, vector<8x128xf32>
    %c6_i32_74 = arith.constant 6 : i32
    %192 = tpu.dynamic_rotate %160 by %c6_i32_74 dim 0 : vector<8x128xf32>, i32 -> vector<8x128xf32>
    %cst_75 = arith.constant 1.000000e+00 : f32
    %193 = vector.broadcast %cst_75 : f32 to vector<8x128xf32>
    %194 = arith.cmpf ogt, %173, %193 : vector<8x128xf32>
    %195 = arith.extui %194 : vector<8x128xi1> to vector<8x128xi32>
    %196 = arith.sitofp %195 : vector<8x128xi32> to vector<8x128xf32>
    %cst_76 = arith.constant 0.899999976 : f32
    %197 = vector.broadcast %cst_76 : f32 to vector<8x128xf32>
    %198 = arith.mulf %197, %173 : vector<8x128xf32>
    %199 = arith.addf %198, %192 : vector<8x128xf32>
    %cst_77 = arith.constant 1.000000e+00 : f32
    %200 = vector.broadcast %cst_77 : f32 to vector<8x128xf32>
    %201 = arith.mulf %196, %200 : vector<8x128xf32>
    %202 = arith.subf %199, %201 : vector<8x128xf32>
    %cst_78 = arith.constant 1.000000e+00 : f32
    %203 = vector.broadcast %cst_78 : f32 to vector<8x128xf32>
    %204 = arith.cmpf ogt, %202, %203 : vector<8x128xf32>
    %205 = arith.extui %204 : vector<8x128xi1> to vector<8x128xi32>
    %206 = arith.sitofp %205 : vector<8x128xi32> to vector<8x128xf32>
    %cst_79 = arith.constant dense<0.000000e+00> : vector<8x128xf32>
    %207 = tpu.matmul %206, %161, %cst_79 {dimension_numbers = #tpu.dot_dimension_numbers<[1], [0], [0], [1], [0, 0, 1, 1], [], []>} : vector<8x128xf32>, vector<128x128xf32>, vector<8x128xf32> -> vector<8x128xf32>
    %208 = vector.broadcast %162 : vector<1x128xf32> to vector<8x128xf32>
    %209 = arith.addf %207, %208 : vector<8x128xf32>
    %cst_80 = arith.constant 1.000000e+00 : f32
    %210 = vector.broadcast %cst_80 : f32 to vector<8x128xf32>
    %211 = arith.cmpf ogt, %190, %210 : vector<8x128xf32>
    %212 = arith.extui %211 : vector<8x128xi1> to vector<8x128xi32>
    %213 = arith.sitofp %212 : vector<8x128xi32> to vector<8x128xf32>
    %cst_81 = arith.constant 0.899999976 : f32
    %214 = vector.broadcast %cst_81 : f32 to vector<8x128xf32>
    %215 = arith.mulf %214, %190 : vector<8x128xf32>
    %216 = arith.addf %215, %209 : vector<8x128xf32>
    %cst_82 = arith.constant 1.000000e+00 : f32
    %217 = vector.broadcast %cst_82 : f32 to vector<8x128xf32>
    %218 = arith.mulf %213, %217 : vector<8x128xf32>
    %219 = arith.subf %216, %218 : vector<8x128xf32>
    %c2_i32_83 = arith.constant 2 : i32
    %220 = tpu.dynamic_rotate %219 by %c2_i32_83 dim 0 : vector<8x128xf32>, i32 -> vector<8x128xf32>
    %221 = arith.select %17, %220, %191 : vector<8x128xi1>, vector<8x128xf32>
    %c4_i32_84 = arith.constant 4 : i32
    %222 = tpu.dynamic_rotate %160 by %c4_i32_84 dim 0 : vector<8x128xf32>, i32 -> vector<8x128xf32>
    %cst_85 = arith.constant 1.000000e+00 : f32
    %223 = vector.broadcast %cst_85 : f32 to vector<8x128xf32>
    %224 = arith.cmpf ogt, %202, %223 : vector<8x128xf32>
    %225 = arith.extui %224 : vector<8x128xi1> to vector<8x128xi32>
    %226 = arith.sitofp %225 : vector<8x128xi32> to vector<8x128xf32>
    %cst_86 = arith.constant 0.899999976 : f32
    %227 = vector.broadcast %cst_86 : f32 to vector<8x128xf32>
    %228 = arith.mulf %227, %202 : vector<8x128xf32>
    %229 = arith.addf %228, %222 : vector<8x128xf32>
    %cst_87 = arith.constant 1.000000e+00 : f32
    %230 = vector.broadcast %cst_87 : f32 to vector<8x128xf32>
    %231 = arith.mulf %226, %230 : vector<8x128xf32>
    %232 = arith.subf %229, %231 : vector<8x128xf32>
    %cst_88 = arith.constant 1.000000e+00 : f32
    %233 = vector.broadcast %cst_88 : f32 to vector<8x128xf32>
    %234 = arith.cmpf ogt, %232, %233 : vector<8x128xf32>
    %235 = arith.extui %234 : vector<8x128xi1> to vector<8x128xi32>
    %236 = arith.sitofp %235 : vector<8x128xi32> to vector<8x128xf32>
    %cst_89 = arith.constant dense<0.000000e+00> : vector<8x128xf32>
    %237 = tpu.matmul %236, %161, %cst_89 {dimension_numbers = #tpu.dot_dimension_numbers<[1], [0], [0], [1], [0, 0, 1, 1], [], []>} : vector<8x128xf32>, vector<128x128xf32>, vector<8x128xf32> -> vector<8x128xf32>
    %238 = vector.broadcast %162 : vector<1x128xf32> to vector<8x128xf32>
    %239 = arith.addf %237, %238 : vector<8x128xf32>
    %cst_90 = arith.constant 1.000000e+00 : f32
    %240 = vector.broadcast %cst_90 : f32 to vector<8x128xf32>
    %241 = arith.cmpf ogt, %219, %240 : vector<8x128xf32>
    %242 = arith.extui %241 : vector<8x128xi1> to vector<8x128xi32>
    %243 = arith.sitofp %242 : vector<8x128xi32> to vector<8x128xf32>
    %cst_91 = arith.constant 0.899999976 : f32
    %244 = vector.broadcast %cst_91 : f32 to vector<8x128xf32>
    %245 = arith.mulf %244, %219 : vector<8x128xf32>
    %246 = arith.addf %245, %239 : vector<8x128xf32>
    %cst_92 = arith.constant 1.000000e+00 : f32
    %247 = vector.broadcast %cst_92 : f32 to vector<8x128xf32>
    %248 = arith.mulf %243, %247 : vector<8x128xf32>
    %249 = arith.subf %246, %248 : vector<8x128xf32>
    %c4_i32_93 = arith.constant 4 : i32
    %250 = tpu.dynamic_rotate %249 by %c4_i32_93 dim 0 : vector<8x128xf32>, i32 -> vector<8x128xf32>
    %251 = arith.select %22, %250, %221 : vector<8x128xi1>, vector<8x128xf32>
    %c2_i32_94 = arith.constant 2 : i32
    %252 = tpu.dynamic_rotate %160 by %c2_i32_94 dim 0 : vector<8x128xf32>, i32 -> vector<8x128xf32>
    %cst_95 = arith.constant 1.000000e+00 : f32
    %253 = vector.broadcast %cst_95 : f32 to vector<8x128xf32>
    %254 = arith.cmpf ogt, %232, %253 : vector<8x128xf32>
    %255 = arith.extui %254 : vector<8x128xi1> to vector<8x128xi32>
    %256 = arith.sitofp %255 : vector<8x128xi32> to vector<8x128xf32>
    %cst_96 = arith.constant 0.899999976 : f32
    %257 = vector.broadcast %cst_96 : f32 to vector<8x128xf32>
    %258 = arith.mulf %257, %232 : vector<8x128xf32>
    %259 = arith.addf %258, %252 : vector<8x128xf32>
    %cst_97 = arith.constant 1.000000e+00 : f32
    %260 = vector.broadcast %cst_97 : f32 to vector<8x128xf32>
    %261 = arith.mulf %256, %260 : vector<8x128xf32>
    %262 = arith.subf %259, %261 : vector<8x128xf32>
    %cst_98 = arith.constant 1.000000e+00 : f32
    %263 = vector.broadcast %cst_98 : f32 to vector<8x128xf32>
    %264 = arith.cmpf ogt, %262, %263 : vector<8x128xf32>
    %265 = arith.extui %264 : vector<8x128xi1> to vector<8x128xi32>
    %266 = arith.sitofp %265 : vector<8x128xi32> to vector<8x128xf32>
    %cst_99 = arith.constant dense<0.000000e+00> : vector<8x128xf32>
    %267 = tpu.matmul %266, %161, %cst_99 {dimension_numbers = #tpu.dot_dimension_numbers<[1], [0], [0], [1], [0, 0, 1, 1], [], []>} : vector<8x128xf32>, vector<128x128xf32>, vector<8x128xf32> -> vector<8x128xf32>
    %268 = vector.broadcast %162 : vector<1x128xf32> to vector<8x128xf32>
    %269 = arith.addf %267, %268 : vector<8x128xf32>
    %cst_100 = arith.constant 1.000000e+00 : f32
    %270 = vector.broadcast %cst_100 : f32 to vector<8x128xf32>
    %271 = arith.cmpf ogt, %249, %270 : vector<8x128xf32>
    %272 = arith.extui %271 : vector<8x128xi1> to vector<8x128xi32>
    %273 = arith.sitofp %272 : vector<8x128xi32> to vector<8x128xf32>
    %cst_101 = arith.constant 0.899999976 : f32
    %274 = vector.broadcast %cst_101 : f32 to vector<8x128xf32>
    %275 = arith.mulf %274, %249 : vector<8x128xf32>
    %276 = arith.addf %275, %269 : vector<8x128xf32>
    %cst_102 = arith.constant 1.000000e+00 : f32
    %277 = vector.broadcast %cst_102 : f32 to vector<8x128xf32>
    %278 = arith.mulf %273, %277 : vector<8x128xf32>
    %279 = arith.subf %276, %278 : vector<8x128xf32>
    %c6_i32_103 = arith.constant 6 : i32
    %280 = tpu.dynamic_rotate %279 by %c6_i32_103 dim 0 : vector<8x128xf32>, i32 -> vector<8x128xf32>
    %281 = arith.select %27, %280, %251 : vector<8x128xi1>, vector<8x128xf32>
    %282 = arith.index_cast %158 : i32 to index
    %c0_104 = arith.constant 0 : index
    %283 = vector.load %arg5[%282, %c0_104] : memref<16x128xf32, #tpu.memory_space<vmem>>, vector<8x128xf32>
    tpu.vector_store %arg5[%282, %c0_104], %281 {strides = array<i32>} : memref<16x128xf32, #tpu.memory_space<vmem>>, vector<8x128xf32>,
    %c2_i32_105 = arith.constant 2 : i32
    return
  }
}

</mosaic_0001>

<bundles_post_ra>
// kernel: simple_fc_forward.1
= control target key start
LH: loop header
LB: loop body
LE: loop exit
PB: predicated region body
PF: predicated region fallthrough
CT: control target
= control target key end

     0   :  { %vm30_vm0 = vcmask 261120   ;;  %v431_v27 = vmov 1.0   ;;  %v432_v29 = vmov 0.0   ;;  %s752_s1 = inlined_call_operand.vmem [shape: f32[32,128], index: 1, kind: input, shape index: {}]   ;;  %s753_s3 = inlined_call_operand.vmem [shape: f32[128,128], index: 3, kind: input, shape index: {}]   ;;  %s754_s0 = inlined_call_operand.vmem [shape: f32[16,32], index: 0, kind: input, shape index: {}]   ;;  %s755_s2 = inlined_call_operand.vmem [shape: f32[1,128], index: 2, kind: input, shape index: {}]   ;;  %s756_s4 = inlined_call_operand.vmem [shape: f32[1,128], index: 4, kind: input, shape index: {}]   ;;  %s757_s5 = inlined_call_operand.vmem [shape: f32[16,128], index: 5, kind: output, shape index: {}]  }
   0x1   :  { %v25_v0 = vld [vmem:[%s752_s1 + $0x18] sm:$0xff]  ;;  %v24_v1 = vld [vmem:[%s752_s1 + $0x10] sm:$0xff]  ;;  %v23_v2 = vld [vmem:[%s752_s1 + $0x8] sm:$0xff] }
   0x2   :  { %49 = vmatpush.msra.mxu0 %v25_v0  ;;  %v475_v3 = vld [vmem:[%s753_s3 + $0x78] sm:$0xff]  ;;  %v480_v4 = vld [vmem:[%s753_s3 + $0x70] sm:$0xff]  ;;  %v22_v5 = vld [vmem:[%s752_s1] sm:$0xff] }
   0x3   :  { %105 = vmatpush.msra.mxu1 %v475_v3  ;;  %v489_v6 = vld [vmem:[%s753_s3 + $0x68] sm:$0xff]  ;;  %135 = vmatpush.msra.mxu2 %v475_v3  ;;  %v20_v7 = vld [vmem:[%s754_s0] sm:$0xff]  ;;  %v509_v9 = vld [vmem:[%s753_s3 + $0x58] sm:$0xff] }
   0x4   :  { %50 = vmatpush.msra.mxu0 %v24_v1  ;;  %170 = vmatpush.msra.mxu3 %v475_v3  ;;  %v500_v8 = vld [vmem:[%s753_s3 + $0x60] sm:$0xff]  ;;  %v517_v10 = vld [vmem:[%s753_s3 + $0x50] sm:$0xff]  ;;  %v526_v11 = vld [vmem:[%s753_s3 + $0x48] sm:$0xff] }
   0x5   :  { %106 = vmatpush.msra.mxu1 %v480_v4  ;;  %136 = vmatpush.msra.mxu2 %v480_v4  ;;  %v21_v12 = vld [vmem:[%s754_s0 + $0x8] sm:$0xff]  ;;  %v538_v13 = vld [vmem:[%s753_s3 + $0x40] sm:$0xff]  ;;  %v548_v14 = vld [vmem:[%s753_s3 + $0x38] sm:$0xff] }
   0x6   :  { %51 = vmatpush.msra.mxu0 %v23_v2  ;;  %171 = vmatpush.msra.mxu3 %v480_v4  ;;  %v556_v15 = vld [vmem:[%s753_s3 + $0x30] sm:$0xff]  ;;  %v565_v16 = vld [vmem:[%s753_s3 + $0x28] sm:$0xff]  ;;  %v574_v17 = vld [vmem:[%s753_s3 + $0x20] sm:$0xff] }
   0x7   :  { %107 = vmatpush.msra.mxu1 %v489_v6  ;;  %137 = vmatpush.msra.mxu2 %v489_v6  ;;  %v583_v18 = vld [vmem:[%s753_s3 + $0x18] sm:$0xff]  ;;  %v592_v19 = vld [vmem:[%s753_s3 + $0x10] sm:$0xff]  ;;  %v601_v20 = vld [vmem:[%s753_s3 + $0x8] sm:$0xff] }
   0x8   :  { %52 = vmatpush.msra.mxu0 %v22_v5  ;;  %172 = vmatpush.msra.mxu3 %v489_v6  ;;  %v610_v21 = vld [vmem:[%s753_s3] sm:$0xff] }
   0x9   :  { %400 = vmatmul.msk.f32.vlgmr.msra.gmra.mxu0 %vm30_vm0, %v20_v7  ;;  %108 = vmatpush.msra.mxu1 %v500_v8  ;;  %v428_v22 = vld [vmem:[%s755_s2] ss:$0 sm:$0xff] }
   0xa   :  { %138 = vmatpush.msra.mxu2 %v500_v8  ;;  %205 = vmatpush.msrb.mxu0 %v475_v3  ;;  %v429_v63 = vld [vmem:[%s756_s4] ss:$0 sm:$0xff] }
   0xb   :  { %109 = vmatpush.msra.mxu1 %v509_v9  ;;  %173 = vmatpush.msra.mxu3 %v500_v8 }
   0xc   :  { %139 = vmatpush.msra.mxu2 %v509_v9  ;;  %206 = vmatpush.msrb.mxu0 %v480_v4 }
   0xd   :  { %110 = vmatpush.msra.mxu1 %v517_v10  ;;  %174 = vmatpush.msra.mxu3 %v509_v9 }
   0xe   :  { %140 = vmatpush.msra.mxu2 %v517_v10  ;;  %207 = vmatpush.msrb.mxu0 %v489_v6 }
   0xf   :  { %111 = vmatpush.msra.mxu1 %v526_v11  ;;  %175 = vmatpush.msra.mxu3 %v517_v10 }
  0x10   :  { %141 = vmatpush.msra.mxu2 %v526_v11  ;;  %208 = vmatpush.msrb.mxu0 %v500_v8 }
  0x11   :  { %401 = vmatmul.msk.f32.gmra.mxu0 %vm30_vm0, %v21_v12  ;;  %112 = vmatpush.msra.mxu1 %v538_v13 }
  0x12   :  { %176 = vmatpush.msra.mxu3 %v526_v11  ;;  %142 = vmatpush.msra.mxu2 %v538_v13 }
  0x13   :  { %113 = vmatpush.msra.mxu1 %v548_v14  ;;  %209 = vmatpush.msrb.mxu0 %v509_v9 }
  0x14   :  { %177 = vmatpush.msra.mxu3 %v538_v13  ;;  %143 = vmatpush.msra.mxu2 %v548_v14 }
  0x15   :  { %114 = vmatpush.msra.mxu1 %v556_v15  ;;  %210 = vmatpush.msrb.mxu0 %v517_v10 }
  0x16   :  { %178 = vmatpush.msra.mxu3 %v548_v14  ;;  %144 = vmatpush.msra.mxu2 %v556_v15 }
  0x17   :  { %115 = vmatpush.msra.mxu1 %v565_v16  ;;  %211 = vmatpush.msrb.mxu0 %v526_v11 }
  0x18   :  { %179 = vmatpush.msra.mxu3 %v556_v15  ;;  %145 = vmatpush.msra.mxu2 %v565_v16 }
  0x19   :  { %116 = vmatpush.msra.mxu1 %v574_v17  ;;  %212 = vmatpush.msrb.mxu0 %v538_v13 }
  0x1a   :  { %180 = vmatpush.msra.mxu3 %v565_v16  ;;  %146 = vmatpush.msra.mxu2 %v574_v17 }
  0x1b   :  { %117 = vmatpush.msra.mxu1 %v583_v18  ;;  %213 = vmatpush.msrb.mxu0 %v548_v14 }
  0x1c   :  { %181 = vmatpush.msra.mxu3 %v574_v17  ;;  %147 = vmatpush.msra.mxu2 %v583_v18 }
  0x1d   :  { %118 = vmatpush.msra.mxu1 %v592_v19  ;;  %214 = vmatpush.msrb.mxu0 %v556_v15 }
  0x1e   :  { %182 = vmatpush.msra.mxu3 %v583_v18  ;;  %148 = vmatpush.msra.mxu2 %v592_v19 }
  0x1f   :  { %119 = vmatpush.msra.mxu1 %v601_v20  ;;  %215 = vmatpush.msrb.mxu0 %v565_v16 }
  0x20   :  { %183 = vmatpush.msra.mxu3 %v592_v19  ;;  %149 = vmatpush.msra.mxu2 %v601_v20 }
  0x21   :  { %120 = vmatpush.msra.mxu1 %v610_v21  ;;  %216 = vmatpush.msrb.mxu0 %v574_v17 }
  0x22   :  { %184 = vmatpush.msra.mxu3 %v601_v20  ;;  %150 = vmatpush.msra.mxu2 %v610_v21 }
  0x23   :  { %262 = vmatpush.msrb.mxu1 %v475_v3  ;;  %217 = vmatpush.msrb.mxu0 %v583_v18 }
  0x24   :  { %296 = vmatpush.msrb.mxu2 %v475_v3  ;;  %185 = vmatpush.msra.mxu3 %v610_v21 }
  0x25   :  { %263 = vmatpush.msrb.mxu1 %v480_v4  ;;  %218 = vmatpush.msrb.mxu0 %v592_v19 }
  0x26   :  { %297 = vmatpush.msrb.mxu2 %v480_v4  ;;  %331 = vmatpush.msrb.mxu3 %v475_v3 }
  0x27   :  { %264 = vmatpush.msrb.mxu1 %v489_v6  ;;  %219 = vmatpush.msrb.mxu0 %v601_v20 }
  0x28   :  { %298 = vmatpush.msrb.mxu2 %v489_v6  ;;  %332 = vmatpush.msrb.mxu3 %v480_v4 }
  0x29   :  { %265 = vmatpush.msrb.mxu1 %v500_v8  ;;  %220 = vmatpush.msrb.mxu0 %v610_v21 }
  0x2a   :  { %299 = vmatpush.msrb.mxu2 %v500_v8  ;;  %333 = vmatpush.msrb.mxu3 %v489_v6 }
  0x2b   :  { %266 = vmatpush.msrb.mxu1 %v509_v9  ;;  %366 = vmatpush.msra.mxu0 %v475_v3 }
  0x2c   :  { %300 = vmatpush.msrb.mxu2 %v509_v9  ;;  %334 = vmatpush.msrb.mxu3 %v500_v8 }
  0x2d   :  { %267 = vmatpush.msrb.mxu1 %v517_v10  ;;  %367 = vmatpush.msra.mxu0 %v480_v4 }
  0x2e   :  { %301 = vmatpush.msrb.mxu2 %v517_v10  ;;  %335 = vmatpush.msrb.mxu3 %v509_v9 }
  0x2f   :  { %268 = vmatpush.msrb.mxu1 %v526_v11  ;;  %368 = vmatpush.msra.mxu0 %v489_v6 }
  0x30   :  { %302 = vmatpush.msrb.mxu2 %v526_v11  ;;  %336 = vmatpush.msrb.mxu3 %v517_v10 }
  0x31   :  { %269 = vmatpush.msrb.mxu1 %v538_v13  ;;  %369 = vmatpush.msra.mxu0 %v500_v8  ;;  %v62_v8 = vlaneseq }
  0x32   :  { %303 = vmatpush.msrb.mxu2 %v538_v13  ;;  %337 = vmatpush.msrb.mxu3 %v526_v11 }
  0x33   :  { %270 = vmatpush.msrb.mxu1 %v548_v14  ;;  %370 = vmatpush.msra.mxu0 %v509_v9 }
  0x34   :  { %304 = vmatpush.msrb.mxu2 %v548_v14  ;;  %338 = vmatpush.msrb.mxu3 %v538_v13 }
  0x35   :  { %271 = vmatpush.msrb.mxu1 %v556_v15  ;;  %371 = vmatpush.msra.mxu0 %v517_v10 }
  0x36   :  { %305 = vmatpush.msrb.mxu2 %v556_v15  ;;  %339 = vmatpush.msrb.mxu3 %v548_v14 }
  0x37   :  { %272 = vmatpush.msrb.mxu1 %v565_v16  ;;  %372 = vmatpush.msra.mxu0 %v526_v11 }
  0x38   :  { %306 = vmatpush.msrb.mxu2 %v565_v16  ;;  %340 = vmatpush.msrb.mxu3 %v556_v15 }
  0x39   :  { %273 = vmatpush.msrb.mxu1 %v574_v17  ;;  %373 = vmatpush.msra.mxu0 %v538_v13  ;;  %v705_v13 = vshrl.u32 %v62_v8, 7 }
  0x3a   :  { %307 = vmatpush.msrb.mxu2 %v574_v17  ;;  %341 = vmatpush.msrb.mxu3 %v565_v16 }
  0x3b   :  { %274 = vmatpush.msrb.mxu1 %v583_v18  ;;  %374 = vmatpush.msra.mxu0 %v548_v14  ;;  %vm67_vm11 = vcmp.ge.s32.totalorder %v705_v13, 2  ;;  %vm68_vm12 = vcmp.lt.s32.totalorder %v705_v13, 4  ;;  %vm65_vm14 = vcmp.lt.s32.totalorder %v705_v13, 2  ;;  %vm70_vm15 = vcmp.ge.s32.totalorder %v705_v13, 4 }
  0x3c   :  { %308 = vmatpush.msrb.mxu2 %v583_v18  ;;  %342 = vmatpush.msrb.mxu3 %v574_v17  ;;  %vm71_vm0 = vcmp.lt.s32.totalorder %v705_v13, 6 }
  0x3d   :  { %275 = vmatpush.msrb.mxu1 %v592_v19  ;;  %375 = vmatpush.msra.mxu0 %v556_v15 }
  0x3e   :  { %309 = vmatpush.msrb.mxu2 %v592_v19  ;;  %343 = vmatpush.msrb.mxu3 %v583_v18 }
  0x3f   :  { %276 = vmatpush.msrb.mxu1 %v601_v20  ;;  %376 = vmatpush.msra.mxu0 %v565_v16 }
  0x40   :  { %310 = vmatpush.msrb.mxu2 %v601_v20  ;;  %344 = vmatpush.msrb.mxu3 %v592_v19 }
  0x41   :  { %277 = vmatpush.msrb.mxu1 %v610_v21  ;;  %377 = vmatpush.msra.mxu0 %v574_v17 }
  0x42   :  { %311 = vmatpush.msrb.mxu2 %v610_v21  ;;  %345 = vmatpush.msrb.mxu3 %v601_v20 }
  0x43   :  { %378 = vmatpush.msra.mxu0 %v583_v18 }
  0x44   :  { %346 = vmatpush.msrb.mxu3 %v610_v21 }
  0x45   :  { %379 = vmatpush.msra.mxu0 %v592_v19 }
  0x47   :  { %380 = vmatpush.msra.mxu0 %v601_v20 }
  0x49   :  { %381 = vmatpush.msra.mxu0 %v610_v21 }
  0x86   :  { %v54_v23 = vpop.f32.mrf.mxu0 }
  0x87   :  { %v55_v24 = vadd.f32 %v428_v22, %v54_v23 }
  0x89   :  { %vm99_vm1 = vcmp.gt.f32.partialorder %v55_v24, 1.0  ;;  %v128_v25 = vrot.slane %v55_v24, 2  ;;  %v129_v26 = vmul.f32 0.9, %v55_v24  ;;  %v163_v33 = vrot.slane %v55_v24, 4 }
  0x8a   :  { %403 = vmatmul.msk.f32.vlgmr.msra.gmra.mxu1 %vm99_vm1, %v431_v27  ;;  %v402_v30 = vsel %vm99_vm1, 1.0, %v432_v29  ;;  %v198_v37 = vrot.slane %v55_v24, 6  ;;  %vm713_vm1 = vmand %vm67_vm11, %vm68_vm12 }
  0x8b   :  { %v130_v28 = vadd.f32 %v129_v26, %v128_v25 }
  0x8d   :  { %v131_v31 = vsub.f32 %v130_v28, %v402_v30 }
  0x8e   :  { %v57_v39 = vpop.f32.mrf.mxu0 }
  0x8f   :  { %vm132_vm2 = vcmp.gt.f32.partialorder %v131_v31, 1.0  ;;  %v164_v32 = vmul.f32 0.9, %v131_v31  ;;  %v58_v43 = vadd.f32 %v428_v22, %v57_v39  ;;  %v430_v22 = vld [vmem:[%s756_s4] ss:$0 sm:$0xff] }
  0x90   :  { %405 = vmatmul.msk.f32.vlgmr.msra.gmra.mxu2 %vm132_vm2, %v431_v27  ;;  %v404_v35 = vsel %vm132_vm2, 1.0, %v432_v29  ;;  %vm723_vm2 = vmand %vm70_vm15, %vm71_vm0 }
  0x91   :  { %v165_v34 = vadd.f32 %v164_v32, %v163_v33  ;;  %v289_v48 = vrot.slane %v58_v43, 2  ;;  %v324_v53 = vrot.slane %v58_v43, 4  ;;  %v359_v58 = vrot.slane %v58_v43, 6 }
  0x93   :  { %v166_v36 = vsub.f32 %v165_v34, %v404_v35 }
  0x95   :  { %vm167_vm3 = vcmp.gt.f32.partialorder %v166_v36, 1.0  ;;  %v199_v38 = vmul.f32 0.9, %v166_v36 }
  0x96   :  { %408 = vmatmul.msk.f32.vlgmr.msra.gmra.mxu3 %vm167_vm3, %v431_v27  ;;  %v407_v41 = vsel %vm167_vm3, 1.0, %v432_v29  ;;  %vm73_vm3 = vcmp.ge.s32.totalorder %v705_v13, 6 }
  0x97   :  { %v200_v40 = vadd.f32 %v199_v38, %v198_v37 }
  0x99   :  { %v201_v42 = vsub.f32 %v200_v40, %v407_v41 }
  0x9b   :  { %v253_v44 = vmul.f32 0.9, %v201_v42  ;;  %vm202_vm4 = vcmp.gt.f32.partialorder %v201_v42, 1.0 }
  0x9c   :  { %411 = vmatmul.msk.f32.vlgmr.msrb.gmra.mxu0 %vm202_vm4, %v431_v27  ;;  %v410_v46 = vsel %vm202_vm4, 1.0, %v432_v29 }
  0x9d   :  { %v254_v45 = vadd.f32 %v253_v44, %v58_v43 }
  0x9f   :  { %v255_v47 = vsub.f32 %v254_v45, %v410_v46 }
  0xa1   :  { %vm256_vm5 = vcmp.gt.f32.partialorder %v255_v47, 1.0  ;;  %v290_v49 = vmul.f32 0.9, %v255_v47 }
  0xa2   :  { %414 = vmatmul.msk.f32.vlgmr.msrb.gmra.mxu1 %vm256_vm5, %v431_v27  ;;  %v413_v51 = vsel %vm256_vm5, 1.0, %v432_v29 }
  0xa3   :  { %v291_v50 = vadd.f32 %v290_v49, %v289_v48 }
  0xa5   :  { %v292_v52 = vsub.f32 %v291_v50, %v413_v51 }
  0xa7   :  { %vm293_vm6 = vcmp.gt.f32.partialorder %v292_v52, 1.0  ;;  %v325_v54 = vmul.f32 0.9, %v292_v52 }
  0xa8   :  { %417 = vmatmul.msk.f32.vlgmr.msrb.gmra.mxu2 %vm293_vm6, %v431_v27  ;;  %v416_v56 = vsel %vm293_vm6, 1.0, %v432_v29 }
  0xa9   :  { %v326_v55 = vadd.f32 %v325_v54, %v324_v53 }
  0xab   :  { %v327_v57 = vsub.f32 %v326_v55, %v416_v56 }
  0xad   :  { %vm328_vm7 = vcmp.gt.f32.partialorder %v327_v57, 1.0  ;;  %v360_v59 = vmul.f32 0.9, %v327_v57 }
  0xae   :  { %420 = vmatmul.msk.f32.vlgmr.msrb.gmra.mxu3 %vm328_vm7, %v431_v27  ;;  %v419_v61 = vsel %vm328_vm7, 1.0, %v432_v29 }
  0xaf   :  { %v361_v60 = vadd.f32 %v360_v59, %v359_v58 }
  0xb1   :  { %v362_v62 = vsub.f32 %v361_v60, %v419_v61 }
  0xb3   :  { %vm363_vm8 = vcmp.gt.f32.partialorder %v362_v62, 1.0 }
  0xb4   :  { %423 = vmatmul.msk.f32.vlgmr.msra.gmra.mxu0 %vm363_vm8, %v431_v27 }
 0x107   :  { %v122_v0 = vpop.f32.mrf.mxu1 }
 0x108   :  { %v123_v1 = vadd.f32 %v429_v63, %v122_v0 }
 0x10a   :  { %vm155_vm9 = vcmp.gt.f32.partialorder %v123_v1, 1.0  ;;  %v158_v4 = vmul.f32 0.9, %v123_v1  ;;  %v127_v26 = vsel %vm65_vm14, %v123_v1, 0.0 }
 0x10b   :  { %v406_v6 = vsel %vm155_vm9, 1.0, %v432_v29 }
 0x113   :  { %v152_v2 = vpop.f32.mrf.mxu2 }
 0x114   :  { %v153_v3 = vadd.f32 %v429_v63, %v152_v2 }
 0x116   :  { %v159_v5 = vadd.f32 %v158_v4, %v153_v3 }
 0x118   :  { %v160_v7 = vsub.f32 %v159_v5, %v406_v6 }
 0x119   :  { %v187_v9 = vpop.f32.mrf.mxu3  ;;  %v222_v15 = vpop.f32.mrf.mxu0 }
 0x11a   :  { %v188_v10 = vadd.f32 %v429_v63, %v187_v9  ;;  %vm190_vm10 = vcmp.gt.f32.partialorder %v160_v7, 1.0  ;;  %v193_v11 = vmul.f32 0.9, %v160_v7  ;;  %v223_v17 = vadd.f32 %v429_v63, %v222_v15 }
 0x11b   :  { %v409_v14 = vsel %vm190_vm10, 1.0, %v432_v29  ;;  %v161_v19 = vrot.slane %v160_v7, 6 }
 0x11c   :  { %v194_v12 = vadd.f32 %v193_v11, %v188_v10 }
 0x11d   :  { %v162_v30 = vsel %vm713_vm1, %v161_v19, %v127_v26 }
 0x11e   :  { %v195_v16 = vsub.f32 %v194_v12, %v409_v14 }
 0x11f   :  { %v279_v25 = vpop.f32.mrf.mxu1 }
 0x120   :  { %vm225_vm13 = vcmp.gt.f32.partialorder %v195_v16, 1.0  ;;  %v228_v18 = vmul.f32 0.9, %v195_v16  ;;  %v196_v23 = vrot.slane %v195_v16, 4  ;;  %v280_v32 = vadd.f32 %v430_v22, %v279_v25 }
 0x121   :  { %v412_v24 = vsel %vm225_vm13, 1.0, %v432_v29 }
 0x122   :  { %v229_v21 = vadd.f32 %v228_v18, %v223_v17  ;;  %v197_v34 = vsel %vm723_vm2, %v196_v23, %v162_v30 }
 0x124   :  { %v230_v28 = vsub.f32 %v229_v21, %v412_v24 }
 0x126   :  { %v231_v31 = vrot.slane %v230_v28, 2  ;;  %vm282_vm4 = vcmp.gt.f32.partialorder %v230_v28, 1.0  ;;  %v285_v33 = vmul.f32 0.9, %v230_v28 }
 0x127   :  { %v415_v37 = vsel %vm282_vm4, 1.0, %v432_v29 }
 0x128   :  { %v286_v35 = vadd.f32 %v285_v33, %v280_v32  ;;  %v232_v36 = vsel %vm73_vm3, %v231_v31, %v197_v34 }
 0x129   :  { %233 = vst [vmem:[%s757_s5] sm:$0xff] %v232_v36 }
 0x12a   :  { %v287_v38 = vsub.f32 %v286_v35, %v415_v37 }
 0x12b   :  { %v313_v39 = vpop.f32.mrf.mxu2 }
 0x12c   :  { %v314_v40 = vadd.f32 %v430_v22, %v313_v39  ;;  %vm316_vm5 = vcmp.gt.f32.partialorder %v287_v38, 1.0  ;;  %v319_v41 = vmul.f32 0.9, %v287_v38  ;;  %v288_v59 = vsel %vm65_vm14, %v287_v38, 0.0 }
 0x12d   :  { %v418_v43 = vsel %vm316_vm5, 1.0, %v432_v29 }
 0x12e   :  { %v320_v42 = vadd.f32 %v319_v41, %v314_v40 }
 0x130   :  { %v321_v44 = vsub.f32 %v320_v42, %v418_v43 }
 0x131   :  { %v348_v45 = vpop.f32.mrf.mxu3  ;;  %v383_v50 = vpop.f32.mrf.mxu0 }
 0x132   :  { %v349_v46 = vadd.f32 %v430_v22, %v348_v45  ;;  %vm351_vm6 = vcmp.gt.f32.partialorder %v321_v44, 1.0  ;;  %v354_v47 = vmul.f32 0.9, %v321_v44  ;;  %v384_v52 = vadd.f32 %v430_v22, %v383_v50 }
 0x133   :  { %v421_v49 = vsel %vm351_vm6, 1.0, %v432_v29  ;;  %v322_v54 = vrot.slane %v321_v44, 6 }
 0x134   :  { %v355_v48 = vadd.f32 %v354_v47, %v349_v46 }
 0x135   :  { %v323_v60 = vsel %vm713_vm1, %v322_v54, %v288_v59 }
 0x136   :  { %v356_v51 = vsub.f32 %v355_v48, %v421_v49 }
 0x138   :  { %vm386_vm7 = vcmp.gt.f32.partialorder %v356_v51, 1.0  ;;  %v389_v53 = vmul.f32 0.9, %v356_v51  ;;  %v357_v56 = vrot.slane %v356_v51, 4 }
 0x139   :  { %v424_v57 = vsel %vm386_vm7, 1.0, %v432_v29 }
 0x13a   :  { %v390_v55 = vadd.f32 %v389_v53, %v384_v52  ;;  %v358_v62 = vsel %vm723_vm2, %v357_v56, %v323_v60 }
 0x13c   :  { %v391_v58 = vsub.f32 %v390_v55, %v424_v57 }
 0x13e   :  { %v392_v61 = vrot.slane %v391_v58, 2 }
 0x140   :  { %v393_v63 = vsel %vm73_vm3, %v392_v61, %v358_v62 }
 0x141   :  { %425 = vst [vmem:[%s757_s5 + $0x8] sm:$0xff] %v393_v63 }

</bundles_post_ra>
